<compile_context>
chip_gen: v7x
topology: tpu7x:2x2x1
jax: 0.10.0
libtpu: 0.0.40
codegen_flags: <defaults>
</compile_context>

<pallas_src>
import math

import jax
import jax.numpy as jnp
from jax.experimental import pallas as pl
from jax.experimental.pallas import tpu as pltpu


def _copy_kernel(x_ref, o_ref):
    # Pure lane-dense VMEM tile copy; the view itself is free and done outside.
    o_ref[...] = x_ref[...]


def _vmem_aware_target_bytes() -> int:
    """Per-tile byte budget.

    ~2 MiB on small-VMEM parts (v7x: 64 MiB physical / 32 MiB default scoped),
    ~4 MiB on 128-MiB-VMEM parts (v5e/v6e).  With one input and one output,
    each double-buffered, the pipelined footprint is <= 4x this budget, which
    stays well under the scoped-VMEM limit on every generation.
    """
    try:
        vmem = pltpu.get_tpu_info().vmem_capacity_bytes
    except Exception:  # pragma: no cover - conservative fallback
        vmem = 0
    if vmem >= 100 * 1024 * 1024:      # v5e / v6e class (128 MiB VMEM)
        return 4 * 1024 * 1024
    return 2 * 1024 * 1024             # v7x / unknown: stay conservative


def _sublane_multiple(itemsize: int) -> int:
    # Native second-minor tile height: 8 (4-byte), 16 (2-byte), 32 (1-byte).
    return {1: 32, 2: 16}.get(itemsize, 8)


def _choose_tiles(b: int, flat: int, itemsize: int, target_bytes: int):
    """Pick a (tb, tf) tile for a (b, flat) copy.

    * tf: multiple of 128 lanes (keeps stores unmasked / lane-dense), or the
      full `flat` extent when flat isn't a multiple of 128.
    * tb: multiple of the dtype's packed-sublane count, or the full batch
      (full-extent blocks always satisfy the (8, 128) tiling rule).
    * tb * tf * itemsize <= target_bytes whenever the lane axis is tileable.
    """
    sub = _sublane_multiple(itemsize)

    if flat % 128 != 0:
        # Full lane extent keeps the output stores lane-dense (no vst.msk).
        tf = flat
    else:
        max_lanes = (target_bytes // (sub * itemsize) // 128) * 128
        tf = int(min(flat, max(128, max_lanes)))

    rows = target_bytes // max(1, tf * itemsize)
    if rows >= b:
        tb = b                                   # full extent: always legal
    else:
        tb = int(min(b, max(sub, (rows // sub) * sub)))
    return tb, tf


def unflatten(x: jax.Array, ndims, *, use_pallas_copy: bool = True,
              alias_input: bool = False,
              tile_bytes_target: int | None = None) -> jax.Array:
    """Pallas equivalent of `x.view(x.size(0), *ndims)`.

    use_pallas_copy=False  -> pure metadata reshape (recommended default).
    use_pallas_copy=True   -> explicit pipelined lane-dense Pallas copy.
    alias_input=True       -> alias output onto the input buffer (only useful
                              when the caller donates the source buffer).
    """
    ndims = tuple(int(d) for d in ndims)
    b = x.shape[0]
    flat = int(math.prod(x.shape[1:]))
    assert flat == int(math.prod(ndims)), (
        f"cannot view {x.shape} as {(b, *ndims)}"
    )

    if not use_pallas_copy:
        # A view is metadata-only: zero HBM traffic, zero kernel launches.
        return x.reshape(b, *ndims)

    # Contiguous row-major flatten mirrors what torch .view() sees.
    x2d = x.reshape(b, flat)
    itemsize = x2d.dtype.itemsize
    target = tile_bytes_target or _vmem_aware_target_bytes()
    tb, tf = _choose_tiles(b, flat, itemsize, target)

    extra = {}
    if alias_input:
        # Requires the source buffer to be donated at the jit boundary to
        # actually avoid the copy-in; semantics are unchanged either way.
        extra["input_output_aliases"] = {0: 0}

    y2d = pl.pallas_call(
        _copy_kernel,
        out_shape=jax.ShapeDtypeStruct((b, flat), x2d.dtype),
        grid=(pl.cdiv(b, tb), pl.cdiv(flat, tf)),
        in_specs=[pl.BlockSpec((tb, tf), lambda i, j: (i, j))],
        out_specs=pl.BlockSpec((tb, tf), lambda i, j: (i, j)),
        compiler_params=pltpu.CompilerParams(
            dimension_semantics=("parallel", "parallel"),
            vmem_limit_bytes=32 * 1024 * 1024,
        ),
        cost_estimate=pl.CostEstimate(
            flops=0,
            transcendentals=0,
            bytes_accessed=2 * b * flat * itemsize,
        ),
        **extra,
    )(x2d)

    # Final (B, *ndims) view is free (metadata-only) outside the kernel.
    return y2d.reshape(b, *ndims)


if __name__ == "__main__":
    # Module config: Unflatten(ndims=(4, 16, 16)); input as delivered by an
    # upstream Flatten/Linear: (B, C*H*W).
    ndims = (4, 16, 16)
    batch = 2
    flat = math.prod(ndims)

    key = jax.random.PRNGKey(0)
    x = jax.random.normal(key, (batch, flat), dtype=jnp.float32)
    y_ref = x.reshape(batch, *ndims)

    # 1) Pallas-kernel copy path.
    y = jax.block_until_ready(unflatten(x, ndims, use_pallas_copy=True))
    assert y.shape == (batch, *ndims), y.shape
    assert y.dtype == x.dtype
    assert bool(jnp.array_equal(y, y_ref))

    # 2) Pure-view fast path (recommended production default).
    y_fast = jax.block_until_ready(unflatten(x, ndims, use_pallas_copy=False))
    assert bool(jnp.array_equal(y_fast, y_ref))

    # 3) bf16 exercises the dtype-dependent sublane rounding.
    xb = x.astype(jnp.bfloat16)
    yb = jax.block_until_ready(unflatten(xb, ndims, use_pallas_copy=True))
    assert bool(jnp.array_equal(yb, xb.reshape(batch, *ndims)))

    # 4) Force a multi-step, batch-tiled grid with a tiny tile budget to
    #    exercise the 2-D tiling / pipelining path.
    x3 = jax.random.normal(jax.random.PRNGKey(0), (64, flat), jnp.float32)
    y3 = jax.block_until_ready(
        unflatten(x3, ndims, use_pallas_copy=True, tile_bytes_target=32 * 1024))
    assert bool(jnp.array_equal(y3, x3.reshape(64, *ndims)))

    print("KERNEL_OK")
</pallas_src>

<mosaic_0001>
module attributes {stable_mosaic.version = 11 : i64} {
  func.func @_copy_kernel(%arg0: i32, %arg1: i32, %arg2: memref<2x1024xf32, #tpu.memory_space<vmem>>, %arg3: memref<2x1024xf32, #tpu.memory_space<vmem>>) attributes {dimension_semantics = [#tpu.dimension_semantics<parallel>, #tpu.dimension_semantics<parallel>], iteration_bounds = array<i64: 1, 1>, scalar_prefetch = 0 : i64, scratch_operands = 0 : i64, tpu.core_type = #tpu.core_type<tc>, window_params = [{transform_indices = @transform_0, window_bounds = array<i64: 2, 1024>}, {transform_indices = @transform_1, window_bounds = array<i64: 2, 1024>}]} {
    %c0 = arith.constant 0 : index
    %c0_0 = arith.constant 0 : index
    %0 = vector.load %arg2[%c0, %c0_0] : memref<2x1024xf32, #tpu.memory_space<vmem>>, vector<2x1024xf32>
    %c0_1 = arith.constant 0 : index
    %c0_2 = arith.constant 0 : index
    %1 = vector.load %arg3[%c0_1, %c0_2] : memref<2x1024xf32, #tpu.memory_space<vmem>>, vector<2x1024xf32>
    tpu.vector_store %arg3[%c0_1, %c0_2], %0 {strides = array<i32>} : memref<2x1024xf32, #tpu.memory_space<vmem>>, vector<2x1024xf32>,
    return
  }
  func.func @transform_0(%arg0: i32, %arg1: i32) -> (i32, i32) {
    %c0_i32 = arith.constant 0 : i32
    return %arg0, %arg1 : i32, i32
  }
  func.func @transform_1(%arg0: i32, %arg1: i32) -> (i32, i32) {
    %c0_i32 = arith.constant 0 : i32
    return %arg0, %arg1 : i32, i32
  }
}

</mosaic_0001>

<bundles_post_ra>
// kernel: tpu_custom_call.1
= control target key start
LH: loop header
LB: loop body
LE: loop exit
PB: predicated region body
PF: predicated region fallthrough
CT: control target
= control target key end

     0   :  { %6 = vsyncpa [#allocation3], 0  ;;  %s126_s0 = inlined_call_operand.hbm [shape: f32[2,1024], index: 0, kind: input, shape index: {}]   ;;  %s127_s1 = inlined_call_operand.hbm [shape: f32[2,1024], index: 1, kind: output, shape index: {}]  }
   0x1   :  { %7 = vsyncpa [#allocation4], 0  ;;  %s90_s6 = smov [#allocation2]   ;;  %s42_s10 = scalar_lea.hbm %s126_s0, 256 }
   0x2   :  { %s14_s7 = sshll.u32 %s90_s6, 4  ;;  %p43_p0 = scmp.ne.s32.totalorder %s126_s0, %s42_s10  ;;  %s15_s7 = int_to_ptr.vmem [resolvable:$true] %s14_s7 }
   0x3   :  { %p46_p1 = scmp.lt.u32.totalorder %s42_s10, %s126_s0 }
   0x5   :  { %p48_p2 = pnand %p46_p1, %p43_p0 }
   0x7   :  { %51 = shalt.err (!%p48_p2)
}
   0x8   :  { %s52_s15 = scalar_lea.vmem %s15_s7, 256  ;;  %p57_p4 = scmp.lt.s32.totalorder %s15_s7, %s15_s7 }
   0x9   :  { %p53_p3 = scmp.ne.s32.totalorder %s15_s7, %s52_s15  ;;  %p58_p5 = scmp.lt.s32.totalorder %s52_s15, %s52_s15 }
   0xb   :  { %p59_p6 = por %p58_p5, %p57_p4 }
   0xd   :  { %p60_p7 = pnand %p59_p6, %p53_p3 }
   0xf   :  { %63 = shalt.err (!%p60_p7)
}
  0x10   :  { %17 = dma.hbm_to_vmem [thread:$0]  %s126_s0, 256, %s15_s7, [#allocation3]  }
  0x11   :  { %86 = dma.done.wait [#allocation3], 256  }
  0x12   :  { %87 = vsyncadd [#allocation3], 4294967040  ;;  %s91_s18 = smov [#allocation5]   ;;  %v21_v0 = vld [vmem:[#allocation2] sm:$0xff]  ;;  %v22_v1 = vld [vmem:[#allocation2 + $0x8] sm:$0xff] }
  0x13   :  { %s31_s19 = sshll.u32 %s91_s18, 4  ;;  %23 = vst [vmem:[#allocation5] sm:$0xff] %v21_v0  ;;  %24 = vst [vmem:[#allocation5 + $0x8] sm:$0xff] %v22_v1  ;;  %s32_s19 = int_to_ptr.vmem [resolvable:$true] %s31_s19 }
  0x14   :  { %s64_s20 = scalar_lea.vmem %s32_s19, 256  ;;  %p69_p9 = scmp.lt.s32.totalorder %s32_s19, %s32_s19 }
  0x15   :  { %p65_p8 = scmp.ne.s32.totalorder %s32_s19, %s64_s20  ;;  %p70_p10 = scmp.lt.s32.totalorder %s64_s20, %s64_s20 }
  0x17   :  { %p71_p11 = por %p70_p10, %p69_p9 }
  0x19   :  { %p72_p12 = pnand %p71_p11, %p65_p8 }
  0x1b   :  { %75 = shalt.err (!%p72_p12)
}
  0x1c   :  { %s76_s0 = scalar_lea.hbm %s127_s1, 256 }
  0x1d   :  { %p77_p13 = scmp.ne.s32.totalorder %s127_s1, %s76_s0  ;;  %p80_p0 = scmp.lt.u32.totalorder %s76_s0, %s127_s1 }
  0x1f   :  { %p82_p1 = pnand %p80_p0, %p77_p13 }
  0x21   :  { %85 = shalt.err (!%p82_p1)
}
  0x22   :  { %34 = dma.vmem_to_hbm [thread:$0]  %s32_s19, 256, %s127_s1, [#allocation4]  }
  0x23   :  { %88 = dma.done.wait [#allocation4], 256  }
  0x24   :  { %89 = vsyncadd [#allocation4], 4294967040 }
  0x25   :  { %38 = vsyncpa [#allocation3], 1 }
  0x26   :  { %39 = vsyncpa [#allocation4], 1 }

</bundles_post_ra>
